<compile_context>
chip_gen: v6e
topology: v6e:2x2x1
jax: 0.10.0
libtpu: 0.0.40
codegen_flags: <defaults>
</compile_context>

<pallas_src>
import functools

import jax
import jax.numpy as jnp
from jax import lax
from jax.experimental import pallas as pl
from jax.experimental.pallas import tpu as pltpu


# --------------------------------------------------------------- in-kernel ---

def _accumulate_batch_sums(x_ref):
    """Streamed per-slice f32 accumulation of sum / sum-of-squares over the
    leading (batch) axis; avoids materializing a whole-strip f32 copy."""
    nb = x_ref.shape[0]
    z = jnp.zeros(x_ref.shape[1:], jnp.float32)          # (tc, S)
    if nb <= 8:                                          # static unroll
        s, s2 = z, z
        for i in range(nb):
            xi = x_ref[i].astype(jnp.float32)
            s, s2 = s + xi, s2 + xi * xi
        return s, s2

    def acc(i, carry):
        si, s2i = carry
        xi = x_ref[i].astype(jnp.float32)
        return si + xi, s2i + xi * xi

    return lax.fori_loop(0, nb, acc, (z, z))


def _streamed_affine_store(x_ref, out_ref, a, b):
    """out[i] = x[i] * a + b, one batch slice at a time (keeps peak VMEM low)."""
    nb = x_ref.shape[0]

    def write_one(i):
        xi = x_ref[i].astype(jnp.float32)
        out_ref[i] = (xi * a + b).astype(out_ref.dtype)
    # TODO(synk): on v7x with bf16 outputs, cast a/b to bf16 and do the fma in
    # bf16 to halve VALU work here (skip on v5e: no bf16 VPU).

    if nb <= 8:
        for i in range(nb):
            write_one(i)
    else:
        @pl.loop(0, nb)
        def _(i):
            write_one(i)


# ----------------------------------------------------------------- kernels ---

def _bn_train_kernel(x_ref, g_ref, out_ref, mean_ref, var_ref, *, eps, inv_n):
    """Single pass: batch stats + fused normalize for one (B, tc, S) strip."""
    xsum, x2sum = _accumulate_batch_sums(x_ref)

    # One cross-lane (XLU) reduction per channel strip.
    mean = jnp.sum(xsum, axis=1, keepdims=True) * inv_n           # (tc, 1)
    mean_x2 = jnp.sum(x2sum, axis=1, keepdims=True) * inv_n       # (tc, 1)
    var = jnp.maximum(mean_x2 - mean * mean, 0.0)                 # biased; clamp

    inv_std = lax.rsqrt(var + eps)
    a = g_ref[...] * inv_std              # g = scale * shift (precomputed)
    b = -mean * a
    _streamed_affine_store(x_ref, out_ref, a, b)

    mean_ref[...] = mean
    var_ref[...] = var


def _bn_stats_kernel(x_ref, sum_ref, sqsum_ref):
    """Two-pass fallback, pass 1: accumulate per-channel sum / sum-of-squares
    across a batch-tiled grid axis (accumulator pattern, axis marked arbitrary)."""
    bi = pl.program_id(1)

    @pl.when(bi == 0)
    def _():
        sum_ref[...] = jnp.zeros_like(sum_ref)
        sqsum_ref[...] = jnp.zeros_like(sqsum_ref)

    s, s2 = _accumulate_batch_sums(x_ref)
    sum_ref[...] += jnp.sum(s, axis=1, keepdims=True)
    sqsum_ref[...] += jnp.sum(s2, axis=1, keepdims=True)


def _bn_apply_kernel(x_ref, a_ref, b_ref, out_ref):
    """Normalize pass: out = x * a + b with per-channel a, b (also eval path)."""
    _streamed_affine_store(x_ref, out_ref, a_ref[...], b_ref[...])


# ------------------------------------------------------------ tile picking ---

def _sublane_multiple(dtype):
    itemsize = jnp.dtype(dtype).itemsize
    return max(8, 8 * (4 // max(itemsize, 1)))      # f32: 8, bf16: 16, int8/fp8: 32


def _vmem_budget(strip_budget_override=None):
    """(strip_budget_bytes, vmem_limit_bytes), generation-aware."""
    try:
        cap = int(pltpu.get_tpu_info().vmem_capacity_bytes)
    except Exception:
        cap = 64 * 1024 * 1024                      # conservative (v7x-sized)
    if cap <= 64 * 1024 * 1024:                     # v7x: 64 MiB per TensorCore
        strip_budget, vmem_limit = 2 * 1024 * 1024, 48 * 1024 * 1024
    else:                                           # v5e / v6e: 128 MiB
        strip_budget, vmem_limit = 4 * 1024 * 1024, 96 * 1024 * 1024
    if strip_budget_override is not None:
        strip_budget = int(strip_budget_override)
    return strip_budget, vmem_limit


def _divisors_desc(n):
    return [d for d in range(n, 0, -1) if n % d == 0]


def _pick_channel_tile(B, C, S, dtype, strip_budget_bytes, min_steps=8):
    """Channel tile for the single-pass train kernel; None => use two-pass path."""
    itemsize = jnp.dtype(dtype).itemsize
    m = _sublane_multiple(dtype)
    # One channel costs: input rows (B*S) + f32 accumulators / slice temp rows.
    per_channel = B * S * itemsize + 3 * S * 4
    max_tc_vmem = strip_budget_bytes // per_channel
    cap_pipe = (C // min_steps) // m * m            # keep >= min_steps grid steps
    if cap_pipe >= m:
        tc_target = min(max_tc_vmem, cap_pipe)
    else:
        tc_target = min(max_tc_vmem, C)             # C too small to split that far
    if tc_target >= C:
        return C
    if tc_target >= m:
        tc_target -= tc_target % m
        best = None
        for cand in range(tc_target, 0, -m):        # sublane-aligned divisors only
            if C % cand == 0:
                if (C // cand) % 2 == 0:            # even step count: v7x 2-TC split
                    return cand
                if best is None:
                    best = cand
        if best is not None:
            return best
    # No aligned tile fits/divides: whole-C strip if still modest, else two-pass.
    if C * per_channel <= 2 * strip_budget_bytes:
        return C
    return None


def _pick_bc_tile(B, C, S, dtype, strip_budget_bytes, min_steps=8):
    """(tb, tc) block for the stats / normalize (apply) passes."""
    itemsize = jnp.dtype(dtype).itemsize
    m = _sublane_multiple(dtype)
    per_elem = 2 * itemsize + 4                     # in + out + f32 slice temp
    budget_elems = max(1, strip_budget_bytes // per_elem)
    ch_tiles = [d for d in _divisors_desc(C) if d % m == 0 or d == C]
    b_tiles = _divisors_desc(B)
    feasible = [(tb, tc) for tc in ch_tiles for tb in b_tiles
                if tb * tc * S <= budget_elems]
    if not feasible:
        # Even a minimal block blows the budget; take the smallest and let the
        # raised vmem_limit absorb it.
        # TODO(synk): tile the spatial axis (with lane masking) for extreme S.
        return 1, min(ch_tiles)
    good = [(tb, tc) for (tb, tc) in feasible
            if (C // tc) * (B // tb) >= min_steps]
    pool = good if good else feasible
    tb, tc = max(pool, key=lambda p: p[0] * p[1])
    return tb, tc


# ----------------------------------------------------------------- wrapper ---

def _compiler_params(dim_sem, vmem_limit):
    return pltpu.CompilerParams(dimension_semantics=dim_sem,
                                vmem_limit_bytes=vmem_limit)


def _apply_affine(x3d, a, b, tb, tc, vmem_limit):
    """y = x * a[c] + b[c] over a (tb, tc, S)-blocked grid."""
    B, C, S = x3d.shape
    grid = (C // tc, B // tb)
    x_spec = pl.BlockSpec((tb, tc, S), lambda ci, bi: (bi, ci, 0))
    vec_spec = pl.BlockSpec((tc, 1), lambda ci, bi: (ci, 0))
    return pl.pallas_call(
        _bn_apply_kernel,
        out_shape=jax.ShapeDtypeStruct((B, C, S), x3d.dtype),
        grid_spec=pltpu.PrefetchScalarGridSpec(
            num_scalar_prefetch=0, grid=grid,
            in_specs=[x_spec, vec_spec, vec_spec],
            out_specs=x_spec),
        compiler_params=_compiler_params(("parallel", "parallel"), vmem_limit),
    )(x3d,
      a.reshape(C, 1).astype(jnp.float32),
      b.reshape(C, 1).astype(jnp.float32))


def _batch_stats_two_pass(x3d, tb, tc, vmem_limit):
    """Stats pass of the two-pass fallback; returns (mean, var) of shape (C,)."""
    B, C, S = x3d.shape
    grid = (C // tc, B // tb)
    x_spec = pl.BlockSpec((tb, tc, S), lambda ci, bi: (bi, ci, 0))
    vec_spec = pl.BlockSpec((tc, 1), lambda ci, bi: (ci, 0))
    ssum, sqsum = pl.pallas_call(
        _bn_stats_kernel,
        out_shape=(jax.ShapeDtypeStruct((C, 1), jnp.float32),
                   jax.ShapeDtypeStruct((C, 1), jnp.float32)),
        grid_spec=pltpu.PrefetchScalarGridSpec(
            num_scalar_prefetch=0, grid=grid,
            in_specs=[x_spec],
            out_specs=[vec_spec, vec_spec]),
        compiler_params=_compiler_params(("parallel", "arbitrary"), vmem_limit),
    )(x3d)
    inv_n = 1.0 / float(B * S)
    mean = ssum.reshape(C) * inv_n
    var = jnp.maximum(sqsum.reshape(C) * inv_n - mean * mean, 0.0)
    return mean, var


def batchnorm_forward(x, scale, shift, exp_mean, exp_var, *, eps=1e-5,
                      momentum=0.1, training=True, track_running_stats=True,
                      affine=True, _strip_budget_bytes=None,
                      _force_two_pass=False):
    """x: (B, C, *spatial). Returns (y, new_exp_mean, new_exp_var)."""
    B, C = x.shape[0], x.shape[1]
    S = 1
    for d in x.shape[2:]:
        S *= d
    # TODO(synk): when S % 128 != 0 (e.g. 7x7 late-CNN maps), regroup channels so
    # the lane axis is dense (segmented reduction); currently we knowingly accept
    # the masked-lane store penalty there.
    x3d = x.reshape(B, C, S)             # free contiguous reshape, no transpose

    strip_budget, vmem_limit = _vmem_budget(_strip_budget_bytes)

    if affine:
        g = (scale.astype(jnp.float32) * shift.astype(jnp.float32)).reshape(C)
    else:
        g = jnp.ones((C,), jnp.float32)

    use_batch_stats = training or not track_running_stats

    if use_batch_stats:
        tc = None if _force_two_pass else _pick_channel_tile(
            B, C, S, x.dtype, strip_budget)
        if tc is not None:
            # Single pass: read x once, write y once, stats per channel strip.
            grid = (C // tc,)
            x_spec = pl.BlockSpec((B, tc, S), lambda i: (0, i, 0))
            vec_spec = pl.BlockSpec((tc, 1), lambda i: (i, 0))
            # TODO(synk): lane-dense (1, tc) stats outputs need tc % 128 == 0,
            # which over-constrains channel tiling; keeping (tc, 1) layout.
            kernel = functools.partial(_bn_train_kernel, eps=float(eps),
                                       inv_n=1.0 / float(B * S))
            out3d, mean2d, var2d = pl.pallas_call(
                kernel,
                out_shape=(jax.ShapeDtypeStruct((B, C, S), x.dtype),
                           jax.ShapeDtypeStruct((C, 1), jnp.float32),
                           jax.ShapeDtypeStruct((C, 1), jnp.float32)),
                grid_spec=pltpu.PrefetchScalarGridSpec(
                    num_scalar_prefetch=0, grid=grid,
                    in_specs=[x_spec, vec_spec],
                    out_specs=[x_spec, vec_spec, vec_spec]),
                compiler_params=_compiler_params(("parallel",), vmem_limit),
            )(x3d, g.reshape(C, 1))
            mean = mean2d.reshape(C)
            var = var2d.reshape(C)
        else:
            # Two-pass fallback: activations too large for a channel strip.
            tb2, tc2 = _pick_bc_tile(B, C, S, x.dtype, strip_budget)
            mean, var = _batch_stats_two_pass(x3d, tb2, tc2, vmem_limit)
            inv_std = lax.rsqrt(var + eps)
            a = g * inv_std
            b = -mean * a
            out3d = _apply_affine(x3d, a, b, tb2, tc2, vmem_limit)

        if training and track_running_stats:
            # Module updates running stats with the *biased* batch variance
            # (matches the labml-style reference, unlike torch.nn.BatchNorm).
            new_exp_mean = (1.0 - momentum) * exp_mean + momentum * mean
            new_exp_var = (1.0 - momentum) * exp_var + momentum * var
        else:
            new_exp_mean, new_exp_var = exp_mean, exp_var
    else:
        # Eval: normalize with running statistics (per-channel coeffs in wrapper).
        inv_std = lax.rsqrt(exp_var.astype(jnp.float32) + eps)
        a = g * inv_std
        b = -exp_mean.astype(jnp.float32) * a
        tb2, tc2 = _pick_bc_tile(B, C, S, x.dtype, strip_budget)
        out3d = _apply_affine(x3d, a, b, tb2, tc2, vmem_limit)
        new_exp_mean, new_exp_var = exp_mean, exp_var

    y = out3d.reshape(x.shape)
    return y, new_exp_mean, new_exp_var
    # TODO(synk): `inspect(x_norm)` in the reference module is an undefined
    # debug call; intentionally not reproduced.


# -------------------------------------------------------------- references ---

def _reference_train(x, scale, shift, eps):
    B, C = x.shape[0], x.shape[1]
    xf = x.reshape(B, C, -1).astype(jnp.float32)
    mean = xf.mean(axis=(0, 2))
    var = (xf * xf).mean(axis=(0, 2)) - mean * mean
    xn = (xf - mean[None, :, None]) / jnp.sqrt(var[None, :, None] + eps)
    y = scale[None, :, None] * xn * shift[None, :, None]
    return y.reshape(x.shape), mean, var


def _reference_eval(x, scale, shift, run_mean, run_var, eps):
    B, C = x.shape[0], x.shape[1]
    xf = x.reshape(B, C, -1).astype(jnp.float32)
    xn = (xf - run_mean[None, :, None]) / jnp.sqrt(run_var[None, :, None] + eps)
    y = scale[None, :, None] * xn * shift[None, :, None]
    return y.reshape(x.shape)


if __name__ == "__main__":
    eps, momentum = 1e-5, 0.1

    # --- shape 1: single-pass training path + eval path ---
    B, C, H, W = 2, 4, 16, 16
    x = jax.random.normal(jax.random.PRNGKey(0), (B, C, H, W), dtype=jnp.float32)
    scale = jnp.ones((C,), dtype=jnp.float32)      # nn.Parameter(torch.ones(C))
    shift = jnp.ones((C,), dtype=jnp.float32)      # nn.Parameter(torch.ones(C))
    exp_mean = jnp.zeros((C,), dtype=jnp.float32)  # running-mean buffer
    exp_var = jnp.zeros((C,), dtype=jnp.float32)   # running-var buffer

    y, new_mean, new_var = batchnorm_forward(
        x, scale, shift, exp_mean, exp_var,
        eps=eps, momentum=momentum, training=True, track_running_stats=True)
    jax.block_until_ready((y, new_mean, new_var))

    y_ref, mean_ref, var_ref = _reference_train(x, scale, shift, eps)
    assert y.shape == x.shape and y.dtype == x.dtype
    assert jnp.allclose(y, y_ref, atol=1e-4, rtol=1e-5)
    assert jnp.allclose(new_mean, momentum * mean_ref, atol=1e-5, rtol=1e-5)
    assert jnp.allclose(new_var, momentum * var_ref, atol=1e-5, rtol=1e-5)

    y_eval, _, _ = batchnorm_forward(
        x, scale, shift, new_mean, new_var,
        eps=eps, momentum=momentum, training=False, track_running_stats=True)
    jax.block_until_ready(y_eval)
    y_eval_ref = _reference_eval(x, scale, shift, new_mean, new_var, eps)
    assert jnp.allclose(y_eval, y_eval_ref, atol=1e-4, rtol=1e-5)

    # --- shape 2: exercise the two-pass (stats + normalize) fallback ---
    B2, C2, H2, W2 = 4, 16, 8, 16
    x2 = jax.random.normal(jax.random.PRNGKey(0), (B2, C2, H2, W2),
                           dtype=jnp.float32)
    scale2 = jnp.ones((C2,), dtype=jnp.float32)
    shift2 = jnp.ones((C2,), dtype=jnp.float32)
    zeros2 = jnp.zeros((C2,), dtype=jnp.float32)
    y2, m2, v2 = batchnorm_forward(
        x2, scale2, shift2, zeros2, zeros2,
        eps=eps, momentum=momentum, training=True, track_running_stats=True,
        _force_two_pass=True)
    jax.block_until_ready((y2, m2, v2))
    y2_ref, mean2_ref, var2_ref = _reference_train(x2, scale2, shift2, eps)
    assert jnp.allclose(y2, y2_ref, atol=1e-4, rtol=1e-5)
    assert jnp.allclose(m2, momentum * mean2_ref, atol=1e-5, rtol=1e-5)
    assert jnp.allclose(v2, momentum * var2_ref, atol=1e-5, rtol=1e-5)

    print("KERNEL_OK")
</pallas_src>

<mosaic_0001>
module attributes {stable_mosaic.version = 11 : i64} {
  func.func @_bn_train_kernel(%arg0: i32, %arg1: memref<2x4x256xf32, #tpu.memory_space<vmem>>, %arg2: memref<4x1xf32, #tpu.memory_space<vmem>>, %arg3: memref<2x4x256xf32, #tpu.memory_space<vmem>>, %arg4: memref<4x1xf32, #tpu.memory_space<vmem>>, %arg5: memref<4x1xf32, #tpu.memory_space<vmem>>) attributes {dimension_semantics = [#tpu.dimension_semantics<parallel>], iteration_bounds = array<i64: 1>, scalar_prefetch = 0 : i64, scratch_operands = 0 : i64, tpu.core_type = #tpu.core_type<tc>, window_params = [{transform_indices = @transform_0, window_bounds = array<i64: 2, 4, 256>}, {transform_indices = @transform_1, window_bounds = array<i64: 4, 1>}, {transform_indices = @transform_2, window_bounds = array<i64: 2, 4, 256>}, {transform_indices = @transform_3, window_bounds = array<i64: 4, 1>}, {transform_indices = @transform_4, window_bounds = array<i64: 4, 1>}]} {
    %cst = arith.constant 0.000000e+00 : f32
    %0 = vector.broadcast %cst : f32 to vector<4x256xf32>
    %c0 = arith.constant 0 : index
    %c0_0 = arith.constant 0 : index
    %c0_1 = arith.constant 0 : index
    %1 = vector.load %arg1[%c0, %c0_0, %c0_1] : memref<2x4x256xf32, #tpu.memory_space<vmem>>, vector<1x4x256xf32>
    %2 = vector.shape_cast %1 : vector<1x4x256xf32> to vector<4x256xf32>
    %3 = arith.addf %0, %2 : vector<4x256xf32>
    %4 = arith.mulf %2, %2 : vector<4x256xf32>
    %5 = arith.addf %0, %4 : vector<4x256xf32>
    %c1 = arith.constant 1 : index
    %c0_2 = arith.constant 0 : index
    %c0_3 = arith.constant 0 : index
    %6 = vector.load %arg1[%c1, %c0_2, %c0_3] : memref<2x4x256xf32, #tpu.memory_space<vmem>>, vector<1x4x256xf32>
    %7 = vector.shape_cast %6 : vector<1x4x256xf32> to vector<4x256xf32>
    %8 = arith.addf %3, %7 : vector<4x256xf32>
    %9 = arith.mulf %7, %7 : vector<4x256xf32>
    %10 = arith.addf %5, %9 : vector<4x256xf32>
    %cst_4 = arith.constant dense<0.000000e+00> : vector<4xf32>
    %11 = vector.multi_reduction <add>, %8, %cst_4 [1] : vector<4x256xf32> to vector<4xf32>
    %12 = vector.shape_cast %11 : vector<4xf32> to vector<4x1xf32>
    %cst_5 = arith.constant 0.001953125 : f32
    %13 = vector.broadcast %cst_5 : f32 to vector<4x1xf32>
    %14 = arith.mulf %12, %13 : vector<4x1xf32>
    %cst_6 = arith.constant dense<0.000000e+00> : vector<4xf32>
    %15 = vector.multi_reduction <add>, %10, %cst_6 [1] : vector<4x256xf32> to vector<4xf32>
    %16 = vector.shape_cast %15 : vector<4xf32> to vector<4x1xf32>
    %cst_7 = arith.constant 0.001953125 : f32
    %17 = vector.broadcast %cst_7 : f32 to vector<4x1xf32>
    %18 = arith.mulf %16, %17 : vector<4x1xf32>
    %19 = arith.mulf %14, %14 : vector<4x1xf32>
    %20 = arith.subf %18, %19 : vector<4x1xf32>
    %cst_8 = arith.constant 0.000000e+00 : f32
    %21 = vector.broadcast %cst_8 : f32 to vector<4x1xf32>
    %22 = arith.maximumf %20, %21 : vector<4x1xf32>
    %cst_9 = arith.constant 9.99999974E-6 : f32
    %23 = vector.broadcast %cst_9 : f32 to vector<4x1xf32>
    %24 = arith.addf %22, %23 : vector<4x1xf32>
    %25 = math.rsqrt %24 : vector<4x1xf32>
    %c0_10 = arith.constant 0 : index
    %c0_11 = arith.constant 0 : index
    %26 = vector.load %arg2[%c0_10, %c0_11] : memref<4x1xf32, #tpu.memory_space<vmem>>, vector<4x1xf32>
    %27 = arith.mulf %26, %25 : vector<4x1xf32>
    %cst_12 = arith.constant 0.000000e+00 : f32
    %28 = vector.broadcast %cst_12 : f32 to vector<4x1xf32>
    %29 = arith.subf %28, %14 : vector<4x1xf32>
    %30 = arith.mulf %29, %27 : vector<4x1xf32>
    %c0_13 = arith.constant 0 : index
    %c0_14 = arith.constant 0 : index
    %c0_15 = arith.constant 0 : index
    %31 = vector.load %arg1[%c0_13, %c0_14, %c0_15] : memref<2x4x256xf32, #tpu.memory_space<vmem>>, vector<1x4x256xf32>
    %32 = vector.shape_cast %31 : vector<1x4x256xf32> to vector<4x256xf32>
    %33 = vector.broadcast %27 : vector<4x1xf32> to vector<4x256xf32>
    %34 = arith.mulf %32, %33 : vector<4x256xf32>
    %35 = vector.broadcast %30 : vector<4x1xf32> to vector<4x256xf32>
    %36 = arith.addf %34, %35 : vector<4x256xf32>
    %c0_16 = arith.constant 0 : index
    %c0_17 = arith.constant 0 : index
    %c0_18 = arith.constant 0 : index
    %37 = vector.load %arg3[%c0_16, %c0_17, %c0_18] : memref<2x4x256xf32, #tpu.memory_space<vmem>>, vector<1x4x256xf32>
    %38 = vector.shape_cast %37 : vector<1x4x256xf32> to vector<4x256xf32>
    %39 = vector.shape_cast %36 : vector<4x256xf32> to vector<1x4x256xf32>
    tpu.vector_store %arg3[%c0_16, %c0_17, %c0_18], %39 {strides = array<i32>} : memref<2x4x256xf32, #tpu.memory_space<vmem>>, vector<1x4x256xf32>,
    %c1_19 = arith.constant 1 : index
    %c0_20 = arith.constant 0 : index
    %c0_21 = arith.constant 0 : index
    %40 = vector.load %arg1[%c1_19, %c0_20, %c0_21] : memref<2x4x256xf32, #tpu.memory_space<vmem>>, vector<1x4x256xf32>
    %41 = vector.shape_cast %40 : vector<1x4x256xf32> to vector<4x256xf32>
    %42 = vector.broadcast %27 : vector<4x1xf32> to vector<4x256xf32>
    %43 = arith.mulf %41, %42 : vector<4x256xf32>
    %44 = vector.broadcast %30 : vector<4x1xf32> to vector<4x256xf32>
    %45 = arith.addf %43, %44 : vector<4x256xf32>
    %c1_22 = arith.constant 1 : index
    %c0_23 = arith.constant 0 : index
    %c0_24 = arith.constant 0 : index
    %46 = vector.load %arg3[%c1_22, %c0_23, %c0_24] : memref<2x4x256xf32, #tpu.memory_space<vmem>>, vector<1x4x256xf32>
    %47 = vector.shape_cast %46 : vector<1x4x256xf32> to vector<4x256xf32>
    %48 = vector.shape_cast %45 : vector<4x256xf32> to vector<1x4x256xf32>
    tpu.vector_store %arg3[%c1_22, %c0_23, %c0_24], %48 {strides = array<i32>} : memref<2x4x256xf32, #tpu.memory_space<vmem>>, vector<1x4x256xf32>,
    %c0_25 = arith.constant 0 : index
    %c0_26 = arith.constant 0 : index
    %49 = vector.load %arg4[%c0_25, %c0_26] : memref<4x1xf32, #tpu.memory_space<vmem>>, vector<4x1xf32>
    tpu.vector_store %arg4[%c0_25, %c0_26], %14 {strides = array<i32>} : memref<4x1xf32, #tpu.memory_space<vmem>>, vector<4x1xf32>,
    %c0_27 = arith.constant 0 : index
    %c0_28 = arith.constant 0 : index
    %50 = vector.load %arg5[%c0_27, %c0_28] : memref<4x1xf32, #tpu.memory_space<vmem>>, vector<4x1xf32>
    tpu.vector_store %arg5[%c0_27, %c0_28], %22 {strides = array<i32>} : memref<4x1xf32, #tpu.memory_space<vmem>>, vector<4x1xf32>,
    return
  }
  func.func @transform_0(%arg0: i32) -> (i32, i32, i32) {
    %c0_i32 = arith.constant 0 : i32
    %c0_i32_0 = arith.constant 0 : i32
    %c0_i32_1 = arith.constant 0 : i32
    return %c0_i32, %arg0, %c0_i32_0 : i32, i32, i32
  }
  func.func @transform_1(%arg0: i32) -> (i32, i32) {
    %c0_i32 = arith.constant 0 : i32
    %c0_i32_0 = arith.constant 0 : i32
    return %arg0, %c0_i32 : i32, i32
  }
  func.func @transform_2(%arg0: i32) -> (i32, i32, i32) {
    %c0_i32 = arith.constant 0 : i32
    %c0_i32_0 = arith.constant 0 : i32
    %c0_i32_1 = arith.constant 0 : i32
    return %c0_i32, %arg0, %c0_i32_0 : i32, i32, i32
  }
  func.func @transform_3(%arg0: i32) -> (i32, i32) {
    %c0_i32 = arith.constant 0 : i32
    %c0_i32_0 = arith.constant 0 : i32
    return %arg0, %c0_i32 : i32, i32
  }
  func.func @transform_4(%arg0: i32) -> (i32, i32) {
    %c0_i32 = arith.constant 0 : i32
    %c0_i32_0 = arith.constant 0 : i32
    return %arg0, %c0_i32 : i32, i32
  }
}

</mosaic_0001>

<bundles_post_ra>
// kernel: tpu_custom_call.1
= control target key start
LH: loop header
LB: loop body
LE: loop exit
PB: predicated region body
PF: predicated region fallthrough
CT: control target
= control target key end

     0   :  { %10 = vsyncpa [#allocation3], 0  ;;  %s232_s0 = inlined_call_operand.hbm [shape: f32[2,4,256], index: 0, kind: input, shape index: {}]   ;;  %s233_s1 = inlined_call_operand.vmem [shape: f32[4,1], index: 1, kind: input, shape index: {}]   ;;  %s234_s2 = inlined_call_operand.hbm [shape: f32[2,4,256], index: 2, kind: output, shape index: {0}]   ;;  %s235_s3 = inlined_call_operand.vmem [shape: f32[4,1], index: 3, kind: output, shape index: {1}]   ;;  %s236_s4 = inlined_call_operand.vmem [shape: f32[4,1], index: 4, kind: output, shape index: {2}]  }
   0x1   :  { %11 = vsyncpa [#allocation4], 0  ;;  %s180_s15 = smov [#allocation2]  }
   0x2   :  { %s17_s16 = sshll.u32 %s180_s15, 4  ;;  %s18_s16 = int_to_ptr.vmem [resolvable:$true] %s17_s16 }
   0x3   :  { %s144_s17 = scalar_lea.vmem %s18_s16, 256  ;;  %p149_p1 = scmp.lt.s32.totalorder %s18_s16, %s18_s16 }
   0x4   :  { %p145_p0 = scmp.ne.s32.totalorder %s18_s16, %s144_s17  ;;  %p150_p2 = scmp.lt.s32.totalorder %s144_s17, %s144_s17 }
   0x6   :  { %p151_p3 = por %p150_p2, %p149_p1 }
   0x8   :  { %p152_p4 = pnand %p151_p3, %p145_p0 }
   0xa   :  { %155 = shalt.err (!%p152_p4)
}
   0xb   :  { %s181_s18 = smov 128   ;;  %s182_s19 = smov 8  }
   0xc   :  { %23 = dma.hbm_to_vmem [thread:$0]  %s232_s0, 256, %s18_s16, [#allocation3], %s181_s18, %s181_s18, %s182_s19  }
   0xd   :  { %176 = dma.done.wait [#allocation3], 256  }
   0xe   :  { %177 = vsyncadd [#allocation3], 4294967040  ;;  %v29_v0 = vld [vmem:[#allocation2] sm:$0xff]  ;;  %v34_v1 = vld [vmem:[#allocation2 + $0x8] sm:$0xff]  ;;  %vm41_vm0 = vcmask 1043456   ;;  %v183_v14 = vmov 0   ;;  %v73_v30 = vlaneseq }
   0xf   :  { %v35_v2 = vadd.f32 %v34_v1, %v29_v0  ;;  %v36_v3 = vmul.f32 %v34_v1, %v34_v1  ;;  %v31_v4 = vmul.f32 %v29_v0, %v29_v0  ;;  %132 = vset.pattern.permute.xlu1 %v183_v14  ;;  %133 = vset.pattern.permute.xlu0 %v183_v14  ;;  %vm98_vm1 = vcmask 3072   ;;  %v62_v23 = vld [vmem:[%s233_s1] sm:$0xf] }
  0x10   :  { %v184_v28 = vmov 839922192   ;;  %v74_v32 = vshrl.u32 %v73_v30, 7 }
  0x11   :  { %v39_v5 = vcombine.high %v35_v2, %v35_v2  ;;  %v42_v6 = vsel %vm41_vm0, %v35_v2, 0.0  ;;  %v37_v7 = vadd.f32 %v36_v3, %v31_v4  ;;  %v71_v29 = vunpack.c.l.s4 %v184_v28 }
  0x13   :  { %v43_v8 = vsel %vm41_vm0, %v39_v5, 0.0  ;;  %v49_v9 = vcombine.high %v37_v7, %v37_v7  ;;  %v51_v10 = vsel %vm41_vm0, %v37_v7, 0.0  ;;  %v72_v31 = vunpack.c.0.s8 %v71_v29 }
  0x14   :  { %v44_v11 = vadd.f32 %v43_v8, %v42_v6 }
  0x15   :  { %v52_v12 = vsel %vm41_vm0, %v49_v9, 0.0  ;;  %v75_v33 = vsub.s32 %v72_v31, %v74_v32 }
  0x16   :  { %45 = vadd.xlane.f32.xlu0 %v44_v11  ;;  %v53_v13 = vadd.f32 %v52_v12, %v51_v10 }
  0x1a   :  { %54 = vadd.xlane.f32.xlu0 %v53_v13 }
  0x9f   :  { %v46_v15 = vpop.xlane.xlu0 %45 }
  0xa0   :  { %v47_v16 = vmul.f32 0.001953125, %v46_v15 }
  0xa2   :  { %99 = vst.msk [vmem:[%s235_s3] sm:$0xf] %vm98_vm1, %v47_v16  ;;  %v57_v18 = vmul.f32 %v47_v16, %v47_v16  ;;  %v64_v26 = vsub.f32 0.0, %v47_v16  ;;  %s185_s3 = smov [#allocation5]  }
  0xa3   :  { %v55_v17 = vpop.xlane.xlu0 %54 }
  0xa4   :  { %v56_v19 = vmul.f32 0.001953125, %v55_v17 }
  0xa6   :  { %v58_v20 = vsub.f32 %v56_v19, %v57_v18 }
  0xa8   :  { %v59_v21 = vmax.f32 %v58_v20, 0.0 }
  0xaa   :  { %v60_v22 = vadd.f32 1e-05, %v59_v21  ;;  %100 = vst.msk [vmem:[%s236_s4] sm:$0xf] %vm98_vm1, %v59_v21  ;;  %s106_s4 = sshll.u32 %s185_s3, 4  ;;  %s107_s4 = int_to_ptr.vmem [resolvable:$true] %s106_s4 }
  0xab   :  { %s156_s1 = scalar_lea.vmem %s107_s4, 256  ;;  %p161_p6 = scmp.lt.s32.totalorder %s107_s4, %s107_s4 }
  0xac   :  { %134 = vrsqrt.f32 %v60_v22  ;;  %p157_p5 = scmp.ne.s32.totalorder %s107_s4, %s156_s1  ;;  %p162_p7 = scmp.lt.s32.totalorder %s156_s1, %s156_s1 }
  0xae   :  { %p163_p8 = por %p162_p7, %p161_p6 }
  0xb0   :  { %p164_p9 = pnand %p163_p8, %p157_p5 }
  0xb9   :  { %v135_v24 = vpop.eup %134 }
  0xba   :  { %v63_v25 = vmul.f32 %v135_v24, %v62_v23 }
  0xbc   :  { %68 = vperm.xlu1 %132, %v63_v25   ;;  %v65_v27 = vmul.f32 %v64_v26, %v63_v25 }
  0xc0   :  { %81 = vperm.xlu1 %132, %v65_v27  }
 0x137   :  { %v69_v34 = vpop.permute.xlu1 %68 }
 0x138   :  { %v76_v35 = vrot.slane %v69_v34, %v75_v33 }
 0x13a   :  { %v78_v37 = vmul.f32 %v76_v35, %v29_v0  ;;  %v94_v38 = vmul.f32 %v76_v35, %v34_v1 }
 0x13b   :  { %v82_v36 = vpop.permute.xlu1 %81 }
 0x13c   :  { %v89_v39 = vrot.slane %v82_v36, %v75_v33 }
 0x13e   :  { %v91_v40 = vadd.f32 %v89_v39, %v78_v37  ;;  %v95_v41 = vadd.f32 %v94_v38, %v89_v39 }
 0x140   :  { %92 = vst [vmem:[#allocation5] sm:$0xff] %v91_v40  ;;  %97 = vst [vmem:[#allocation5 + $0x8] sm:$0xff] %v95_v41 }
 0x141   :  { %167 = shalt.err (!%p164_p9)
}
 0x142   :  { %112 = dma.vmem_to_hbm [thread:$0]  %s107_s4, 256, %s234_s2, [#allocation4], %s181_s18, %s181_s18, %s182_s19  }
 0x143   :  { %178 = dma.done.wait [#allocation4], 256  }
 0x144   :  { %179 = vsyncadd [#allocation4], 4294967040 }
 0x145   :  { %124 = vsyncpa [#allocation3], 1 }
 0x146   :  { %125 = vsyncpa [#allocation4], 1 }

</bundles_post_ra>
